<compile_context>
chip_gen: v6e
topology: v6e:2x2x1
jax: 0.10.0
libtpu: 0.0.40
codegen_flags: <defaults>
</compile_context>

<pallas_src>
import functools

import jax
import jax.numpy as jnp
from jax.experimental import pallas as pl
from jax.experimental.pallas import tpu as pltpu


def _cond_entropy_kernel(x_ref, o_ref, acc_ref, *, total_rows, tb, kb):
    p = pl.program_id(0)   # partition (parallel axis, e.g. v7x TensorCores)
    i = pl.program_id(1)   # row-tile index within the partition (reduction)

    @pl.when(i == 0)
    def _init():
        acc_ref[...] = jnp.zeros_like(acc_ref)

    x = x_ref[...].astype(jnp.float32)                           # (TB, C)

    # Mask rows outside the real batch (partial last tile and/or clamped
    # duplicate tail tiles from uneven partitioning).
    row0 = (p * kb + i) * tb
    rows = row0 + jax.lax.broadcasted_iota(jnp.int32, (tb, 1), 0)
    valid = rows < total_rows                                    # (TB, 1)
    x = jnp.where(valid, x, 0.0)

    # sum_c p*logp = sum(e*z)/sum(e) - log(sum(e)),  e = exp(z), z = x - max(x)
    m = jnp.max(x, axis=-1, keepdims=True)
    z = x - m
    e = jnp.exp(z)
    s = jnp.sum(e, axis=-1, keepdims=True)                       # (TB, 1)
    t = jnp.sum(e * z, axis=-1, keepdims=True)                   # (TB, 1)
    per_row = t / s - jnp.log(s)                                 # (TB, 1)
    per_row = jnp.where(valid, per_row, 0.0)

    acc_ref[...] += jnp.sum(per_row, axis=0, keepdims=True)      # (1, 1)

    @pl.when(i == pl.num_programs(1) - 1)
    def _finalize():
        # Broadcast the partition's partial sum across its small output tile.
        o_ref[...] = jnp.broadcast_to(acc_ref[...], o_ref.shape)


def conditional_entropy_loss(x, *, block_rows=512, num_partitions=2):
    """x: (B, C) logits. Returns scalar float32 loss = -mean_b sum_c p*logp."""
    B, C = x.shape

    # Row-tile size: largest of (block_rows, B, VMEM budget), sublane aligned
    # unless it covers the full batch. Keeps a double-buffered tile well under
    # every generation's scoped-VMEM default (v5e 16 MiB .. v7x 32 MiB).
    bytes_per_row = C * jnp.dtype(x.dtype).itemsize
    max_rows_by_vmem = max(8, (4 * 1024 * 1024) // max(1, bytes_per_row))
    tb = min(block_rows, B, max_rows_by_vmem)
    if tb < B:
        tb = max(8, (tb // 8) * 8)
    nb = pl.cdiv(B, tb)                       # total row tiles
    p_parts = max(1, min(num_partitions, nb)) # leading parallel axis (<= 2)
    kb = pl.cdiv(nb, p_parts)                 # row tiles per partition

    if p_parts * kb == nb:
        def row_block(p, i):
            return (p * kb + i, 0)
    else:
        def row_block(p, i):
            # Tail steps of the last partition re-read the final real tile;
            # their rows are masked out inside the kernel.
            return (jnp.minimum(p * kb + i, nb - 1), 0)

    kernel = functools.partial(
        _cond_entropy_kernel, total_rows=B, tb=tb, kb=kb
    )

    # Each partition writes one lane/sublane-aligned (8,128) tile holding its
    # partial sum (broadcast); the wrapper does the tiny final combine.
    partials = pl.pallas_call(
        kernel,
        out_shape=jax.ShapeDtypeStruct((p_parts, 8, 128), jnp.float32),
        grid_spec=pltpu.PrefetchScalarGridSpec(
            num_scalar_prefetch=0,
            grid=(p_parts, kb),
            in_specs=[pl.BlockSpec((tb, C), row_block)],
            out_specs=pl.BlockSpec((1, 8, 128), lambda p, i: (p, 0, 0)),
            scratch_shapes=[pltpu.VMEM((1, 1), jnp.float32)],
        ),
        compiler_params=pltpu.CompilerParams(
            dimension_semantics=("parallel", "arbitrary"),
            vmem_limit_bytes=32 * 1024 * 1024,
        ),
    )(x)

    return -jnp.sum(partials[:, 0, 0]) / B


def _reference(x):
    x = x.astype(jnp.float32)
    logp = jax.nn.log_softmax(x, axis=1)
    p = jax.nn.softmax(x, axis=1)
    b = jnp.sum(p * logp, axis=1)
    return -jnp.mean(b, axis=0)


if __name__ == "__main__":
    key = jax.random.PRNGKey(0)
    k1, k2 = jax.random.split(key)

    # Small shape consistent with the module: (batch, classes) logits.
    B, C = 8, 32
    x = jax.random.normal(k1, (B, C), dtype=jnp.float32)
    out = jax.block_until_ready(conditional_entropy_loss(x))
    ref = _reference(x)
    assert jnp.allclose(out, ref, rtol=1e-5, atol=1e-5), (out, ref)

    # Exercise the tiled / two-partition / masked-tail path with a tiny tile.
    B2, C2 = 20, 128
    x2 = jax.random.normal(k2, (B2, C2), dtype=jnp.float32)
    out2 = jax.block_until_ready(conditional_entropy_loss(x2, block_rows=8))
    ref2 = _reference(x2)
    assert jnp.allclose(out2, ref2, rtol=1e-5, atol=1e-5), (out2, ref2)

    print("KERNEL_OK")
</pallas_src>

<mosaic_0001>
module attributes {stable_mosaic.version = 11 : i64} {
  func.func @_cond_entropy_kernel(%arg0: i32, %arg1: i32, %arg2: memref<8x32xf32, #tpu.memory_space<vmem>>, %arg3: memref<1x8x128xf32, #tpu.memory_space<vmem>>, %arg4: memref<1x1xf32, #tpu.memory_space<vmem>>) attributes {dimension_semantics = [#tpu.dimension_semantics<parallel>, #tpu.dimension_semantics<arbitrary>], iteration_bounds = array<i64: 1, 1>, scalar_prefetch = 0 : i64, scratch_operands = 1 : i64, tpu.core_type = #tpu.core_type<tc>, window_params = [{transform_indices = @transform_0, window_bounds = array<i64: 8, 32>}, {transform_indices = @transform_1, window_bounds = array<i64: 1, 8, 128>}]} {
    %c0_i32 = arith.constant 0 : i32
    %0 = arith.cmpi eq, %arg1, %c0_i32 : i32
    %1 = arith.extui %0 : i1 to i32
    %c0_i32_0 = arith.constant 0 : i32
    %2 = arith.cmpi ne, %1, %c0_i32_0 : i32
    scf.if %2 {
      %cst_14 = arith.constant 0.000000e+00 : f32
      %39 = vector.broadcast %cst_14 : f32 to vector<1x1xf32>
      %c0_15 = arith.constant 0 : index
      %c0_16 = arith.constant 0 : index
      %40 = vector.load %arg4[%c0_15, %c0_16] : memref<1x1xf32, #tpu.memory_space<vmem>>, vector<1x1xf32>
      tpu.vector_store %arg4[%c0_15, %c0_16], %39 {strides = array<i32>} : memref<1x1xf32, #tpu.memory_space<vmem>>, vector<1x1xf32>,
    } else {
    }
    %c0 = arith.constant 0 : index
    %c0_1 = arith.constant 0 : index
    %3 = vector.load %arg2[%c0, %c0_1] : memref<8x32xf32, #tpu.memory_space<vmem>>, vector<8x32xf32>
    %c1_i32 = arith.constant 1 : i32
    %4 = arith.muli %arg0, %c1_i32 : i32
    %5 = arith.addi %4, %arg1 : i32
    %c8_i32 = arith.constant 8 : i32
    %6 = arith.muli %5, %c8_i32 : i32
    %7 = tpu.iota {dimensions = array<i32: 0>} : vector<8x1xi32>
    %8 = vector.broadcast %6 : i32 to vector<8x1xi32>
    %9 = arith.addi %8, %7 : vector<8x1xi32>
    %c8_i32_2 = arith.constant 8 : i32
    %10 = vector.broadcast %c8_i32_2 : i32 to vector<8x1xi32>
    %11 = arith.cmpi slt, %9, %10 : vector<8x1xi32>
    %cst = arith.constant 0.000000e+00 : f32
    %12 = vector.shape_cast %11 : vector<8x1xi1> to vector<8x1xi1>
    %13 = vector.broadcast %12 : vector<8x1xi1> to vector<8x32xi1>
    %14 = vector.broadcast %cst : f32 to vector<8x32xf32>
    %15 = arith.select %13, %3, %14 : vector<8x32xi1>, vector<8x32xf32>
    %cst_3 = arith.constant dense<0xFF800000> : vector<8xf32>
    %16 = vector.multi_reduction <maximumf>, %15, %cst_3 [1] : vector<8x32xf32> to vector<8xf32>
    %17 = vector.shape_cast %16 : vector<8xf32> to vector<8x1xf32>
    %18 = vector.broadcast %17 : vector<8x1xf32> to vector<8x32xf32>
    %19 = arith.subf %15, %18 : vector<8x32xf32>
    %20 = math.exp %19 : vector<8x32xf32>
    %cst_4 = arith.constant dense<0.000000e+00> : vector<8xf32>
    %21 = vector.multi_reduction <add>, %20, %cst_4 [1] : vector<8x32xf32> to vector<8xf32>
    %22 = vector.shape_cast %21 : vector<8xf32> to vector<8x1xf32>
    %23 = arith.mulf %20, %19 : vector<8x32xf32>
    %cst_5 = arith.constant dense<0.000000e+00> : vector<8xf32>
    %24 = vector.multi_reduction <add>, %23, %cst_5 [1] : vector<8x32xf32> to vector<8xf32>
    %25 = vector.shape_cast %24 : vector<8xf32> to vector<8x1xf32>
    %26 = arith.divf %25, %22 : vector<8x1xf32>
    %27 = math.log %22 : vector<8x1xf32>
    %28 = arith.subf %26, %27 : vector<8x1xf32>
    %cst_6 = arith.constant 0.000000e+00 : f32
    %29 = vector.broadcast %cst_6 : f32 to vector<8x1xf32>
    %30 = arith.select %11, %28, %29 : vector<8x1xi1>, vector<8x1xf32>
    %c0_7 = arith.constant 0 : index
    %c0_8 = arith.constant 0 : index
    %31 = vector.load %arg4[%c0_7, %c0_8] : memref<1x1xf32, #tpu.memory_space<vmem>>, vector<1x1xf32>
    %cst_9 = arith.constant dense<0.000000e+00> : vector<1xf32>
    %32 = vector.multi_reduction <add>, %30, %cst_9 [0] : vector<8x1xf32> to vector<1xf32>
    %33 = vector.shape_cast %32 : vector<1xf32> to vector<1x1xf32>
    %34 = arith.addf %31, %33 : vector<1x1xf32>
    %c0_10 = arith.constant 0 : index
    %c0_11 = arith.constant 0 : index
    %35 = vector.load %arg4[%c0_10, %c0_11] : memref<1x1xf32, #tpu.memory_space<vmem>>, vector<1x1xf32>
    tpu.vector_store %arg4[%c0_10, %c0_11], %34 {strides = array<i32>} : memref<1x1xf32, #tpu.memory_space<vmem>>, vector<1x1xf32>,
    %c0_i32_12 = arith.constant 0 : i32
    %36 = arith.cmpi eq, %arg1, %c0_i32_12 : i32
    %37 = arith.extui %36 : i1 to i32
    %c0_i32_13 = arith.constant 0 : i32
    %38 = arith.cmpi ne, %37, %c0_i32_13 : i32
    scf.if %38 {
      %c0_14 = arith.constant 0 : index
      %c0_15 = arith.constant 0 : index
      %39 = vector.load %arg4[%c0_14, %c0_15] : memref<1x1xf32, #tpu.memory_space<vmem>>, vector<1x1xf32>
      %40 = vector.shape_cast %39 : vector<1x1xf32> to vector<1x1x1xf32>
      %41 = vector.broadcast %40 : vector<1x1x1xf32> to vector<1x8x128xf32>
      %c0_16 = arith.constant 0 : index
      %c0_17 = arith.constant 0 : index
      %c0_18 = arith.constant 0 : index
      %42 = vector.load %arg3[%c0_16, %c0_17, %c0_18] : memref<1x8x128xf32, #tpu.memory_space<vmem>>, vector<1x8x128xf32>
      tpu.vector_store %arg3[%c0_16, %c0_17, %c0_18], %41 {strides = array<i32>} : memref<1x8x128xf32, #tpu.memory_space<vmem>>, vector<1x8x128xf32>,
    } else {
    }
    return
  }
  func.func @transform_0(%arg0: i32, %arg1: i32) -> (i32, i32) {
    %c1_i32 = arith.constant 1 : i32
    %0 = arith.muli %arg0, %c1_i32 : i32
    %1 = arith.addi %0, %arg1 : i32
    %c0_i32 = arith.constant 0 : i32
    %c0_i32_0 = arith.constant 0 : i32
    return %1, %c0_i32 : i32, i32
  }
  func.func @transform_1(%arg0: i32, %arg1: i32) -> (i32, i32, i32) {
    %c0_i32 = arith.constant 0 : i32
    %c0_i32_0 = arith.constant 0 : i32
    %c0_i32_1 = arith.constant 0 : i32
    return %arg0, %c0_i32, %c0_i32_0 : i32, i32, i32
  }
}

</mosaic_0001>

<bundles_post_ra>
// kernel: tpu_custom_call.1
= control target key start
LH: loop header
LB: loop body
LE: loop exit
PB: predicated region body
PF: predicated region fallthrough
CT: control target
= control target key end

     0   :  { %6 = vsyncpa [#allocation4], 0  ;;  %s180_s0 = inlined_call_operand.hbm [shape: f32[8,32], index: 0, kind: input, shape index: {}]   ;;  %s181_s1 = inlined_call_operand.hbm [shape: f32[1,8,128], index: 1, kind: output, shape index: {}]  }
   0x1   :  { %7 = vsyncpa [#allocation5], 0  ;;  %s158_s6 = smov [#allocation3]  }
   0x2   :  { %s17_s7 = sshll.u32 %s158_s6, 4  ;;  %s18_s7 = int_to_ptr.vmem [resolvable:$true] %s17_s7 }
   0x3   :  { %s122_s8 = scalar_lea.vmem %s18_s7, 128  ;;  %p127_p1 = scmp.lt.s32.totalorder %s18_s7, %s18_s7 }
   0x4   :  { %p123_p0 = scmp.ne.s32.totalorder %s18_s7, %s122_s8  ;;  %p128_p2 = scmp.lt.s32.totalorder %s122_s8, %s122_s8 }
   0x6   :  { %p129_p3 = por %p128_p2, %p127_p1 }
   0x8   :  { %p130_p4 = pnand %p129_p3, %p123_p0 }
   0xa   :  { %133 = shalt.err (!%p130_p4)
}
   0xb   :  { %20 = dma.hbm_to_vmem [thread:$0]  %s180_s0, 128, %s18_s7, [#allocation4]  }
   0xc   :  { %154 = dma.done.wait [#allocation4], 128  }
   0xd   :  { %155 = vsyncadd [#allocation4], 4294967168  ;;  %vm29_vm0 = vcmask 0   ;;  %v159_v0 = vmov 0.0   ;;  %vm42_vm1 = vcmask 261120   ;;  %v31_v1 = vld [vmem:[#allocation3] sm:$0xff] }
   0xe   :  { %30 = vst.msk [vmem:[#allocation2] sm:$0x1] %vm29_vm0, %v159_v0  ;;  %v43_v2 = vsel %vm42_vm1, %v31_v1, -inf  ;;  %v160_v10 = vmov 0   ;;  %s161_s0 = smov [#allocation6]  }
   0xf   :  { %44 = vmax.xlane.f32.xlu0 %v43_v2  ;;  %106 = vset.pattern.permute.xlu1 %v160_v10  ;;  %s92_s11 = sshll.u32 %s161_s0, 4  ;;  %s93_s11 = int_to_ptr.vmem [resolvable:$true] %s92_s11 }
  0x10   :  { %107 = vset.pattern.permute.xlu0 %v160_v10  ;;  %s134_s12 = scalar_lea.vmem %s93_s11, 128  ;;  %p139_p6 = scmp.lt.s32.totalorder %s93_s11, %s93_s11 }
  0x11   :  { %p135_p5 = scmp.ne.s32.totalorder %s93_s11, %s134_s12  ;;  %p140_p7 = scmp.lt.s32.totalorder %s134_s12, %s134_s12 }
  0x13   :  { %p141_p8 = por %p140_p7, %p139_p6 }
  0x15   :  { %v62_v23 = vld [vmem:[#allocation2] sm:$0x1]  ;;  %p142_p9 = pnand %p141_p8, %p135_p5 }
  0x98   :  { %v45_v3 = vpop.xlane.xlu0 %44 }
  0x99   :  { %v46_v4 = vsub.f32 %v31_v1, %v45_v3 }
  0x9b   :  { %v47_v5 = vmul.f32 1.442695, %v46_v4 }
  0x9d   :  { %108 = vpow2.f32 %v47_v5 }
  0xaa   :  { %v109_v6 = vpop.eup %108 }
  0xab   :  { %v49_v7 = vsel %vm42_vm1, %v109_v6, 0.0  ;;  %v52_v8 = vmul.f32 %v109_v6, %v46_v4 }
  0xac   :  { %50 = vadd.xlane.f32.xlu0 %v49_v7 }
  0xad   :  { %v53_v9 = vsel %vm42_vm1, %v52_v8, 0.0 }
  0xae   :  { %54 = vadd.xlane.f32.xlu1 %v53_v9 }
 0x135   :  { %v51_v11 = vpop.xlane.xlu0 %50 }
 0x136   :  { %110 = vrcp.f32 %v51_v11 }
 0x137   :  { %112 = vlog2.f32 %v51_v11  ;;  %v55_v13 = vpop.xlane.xlu1 %54 }
 0x143   :  { %v111_v12 = vpop.eup %110 }
 0x144   :  { %v113_v14 = vpop.eup %112  ;;  %v57_v15 = vmul.f32 %v111_v12, %v55_v13 }
 0x145   :  { %v59_v16 = vmul.f32 0.6931472, %v113_v14 }
 0x147   :  { %v60_v17 = vsub.f32 %v57_v15, %v59_v16 }
 0x149   :  { %v63_v18 = vrot.slane %v60_v17, 4 }
 0x14b   :  { %v64_v19 = vadd.f32 %v63_v18, %v60_v17 }
 0x14d   :  { %v65_v20 = vrot.slane %v64_v19, 2 }
 0x14f   :  { %v66_v21 = vadd.f32 %v65_v20, %v64_v19 }
 0x151   :  { %v67_v22 = vrot.slane %v66_v21, 1 }
 0x153   :  { %v68_v24 = vadd.f32 %v67_v22, %v66_v21 }
 0x155   :  { %v69_v25 = vadd.f32 %v68_v24, %v62_v23 }
 0x157   :  { %71 = vst.msk [vmem:[#allocation2] sm:$0x1] %vm29_vm0, %v69_v25 }
 0x15e   :  { %v101_v26 = vld [vmem:[#allocation2] ss:$0 sm:$0xff] }
 0x15f   :  { %82 = vperm.xlu1 %106, %v101_v26  }
 0x1da   :  { %v83_v27 = vpop.permute.xlu1 %82 }
 0x1db   :  { %85 = vst [vmem:[#allocation6] sm:$0xff] %v83_v27 }
 0x1dc   :  { %145 = shalt.err (!%p142_p9)
}
 0x1dd   :  { %95 = dma.vmem_to_hbm [thread:$0]  %s93_s11, 128, %s181_s1, [#allocation5]  }
 0x1de   :  { %156 = dma.done.wait [#allocation5], 128  }
 0x1df   :  { %157 = vsyncadd [#allocation5], 4294967168 }
 0x1e0   :  { %99 = vsyncpa [#allocation4], 1 }
 0x1e1   :  { %100 = vsyncpa [#allocation5], 1 }

</bundles_post_ra>
